<compile_context>
chip_gen: v5e
topology: v5e:2x2
jax: 0.10.0
libtpu: 0.0.40
codegen_flags: <defaults>
</compile_context>

<pallas_src>
import math
from functools import partial

import jax
import jax.numpy as jnp
from jax import lax
from jax.experimental import pallas as pl
from jax.experimental.pallas import tpu as pltpu


# Conservative VMEM budget: leaves headroom on v7x (64 MiB physical) and is
# far below v5e/v6e's 128 MiB.
_VMEM_LIMIT_BYTES = 40 * 1024 * 1024


# ---------------------------------------------------------------------------
# tiling helpers
# ---------------------------------------------------------------------------
def _round_up(x, m):
    return ((x + m - 1) // m) * m


def _sublane_align(dtype):
    """Dtype-aware sublane alignment (8 for 4-byte, 16 for 2-byte, 32 for 1B)."""
    return {4: 8, 2: 16, 1: 32}.get(jnp.dtype(dtype).itemsize, 8)


def _pick_tile(dim, target, align=1):
    """Largest tile <= target that divides `dim` and is a multiple of `align`;
    falls back to the full dimension (always a legal block shape)."""
    if dim <= target:
        return dim
    t = (target // align) * align
    while t >= align:
        if dim % t == 0:
            return t
        t -= align
    return dim


def _pick_head_block(num_heads, head_dim, batch, n_q_tiles):
    """Head block: must be a multiple of 8 (sublane) or the full head count."""
    cap = max(8, 4096 // max(head_dim, 1))
    cands = [h for h in range(8, num_heads + 1, 8)
             if num_heads % h == 0 and h <= cap]
    hblk = max(cands) if cands else num_heads
    # v7x megacore: keep at least one "parallel" grid axis with extent >= 2.
    if batch == 1 and n_q_tiles <= 1 and hblk == num_heads:
        smaller = [h for h in cands if h < num_heads]
        if smaller:
            hblk = max(smaller)
    return hblk


# ---------------------------------------------------------------------------
# Linear layer  y = x @ W + b
# ---------------------------------------------------------------------------
def _linear_resident_kernel(x_ref, w_ref, b_ref, o_ref):
    # Weight/bias block index is constant over the grid -> DMA'd exactly once.
    acc = jnp.dot(x_ref[...], w_ref[...], preferred_element_type=jnp.float32)
    o_ref[...] = (acc + b_ref[...].astype(jnp.float32)).astype(o_ref.dtype)


def _linear_tiled_kernel(x_ref, w_ref, b_ref, o_ref, acc_ref):
    @pl.when(pl.program_id(2) == 0)
    def _init():
        acc_ref[...] = jnp.zeros_like(acc_ref)

    acc_ref[...] += jnp.dot(x_ref[...], w_ref[...],
                            preferred_element_type=jnp.float32)

    # Bias only in the epilogue: steady-state K loop is pure MXU + accumulate.
    @pl.when(pl.program_id(2) == pl.num_programs(2) - 1)
    def _finalize():
        o_ref[...] = (acc_ref[...] +
                      b_ref[...].astype(jnp.float32)).astype(o_ref.dtype)


def pallas_linear(x, w, b, *, tm=512, tn=256, tk=512):
    """x: (N, Din), w: (Din, Dout), b: (Dout,) -> (N, Dout)."""
    N, Din = x.shape
    Dout = w.shape[1]
    x_itemsize = jnp.dtype(x.dtype).itemsize
    w_itemsize = jnp.dtype(w.dtype).itemsize
    sub = _sublane_align(x.dtype)

    # Row tile: pad rows to a multiple of the tile so it always divides.
    tm = min(tm, _round_up(N, sub))
    m_pad = _round_up(N, tm)
    if m_pad != N:
        x = jnp.pad(x, ((0, m_pad - N), (0, 0)))
    b2 = b.reshape(1, Dout)

    # Weight-resident path: the whole weight + bias + double-buffered row/out
    # tiles must fit comfortably under the VMEM budget.
    resident_vmem = (2 * (Din * Dout + Dout) * w_itemsize
                     + 2 * tm * (Din + Dout) * x_itemsize)
    use_resident = resident_vmem <= int(0.75 * _VMEM_LIMIT_BYTES)

    if use_resident:
        cost = pl.CostEstimate(
            flops=2 * m_pad * Dout * Din,
            transcendentals=0,
            bytes_accessed=(x_itemsize * (m_pad * Din + m_pad * Dout)
                            + w_itemsize * (Din * Dout + Dout)),
        )
        out = pl.pallas_call(
            _linear_resident_kernel,
            out_shape=jax.ShapeDtypeStruct((m_pad, Dout), x.dtype),
            grid_spec=pltpu.PrefetchScalarGridSpec(
                num_scalar_prefetch=0,
                grid=(m_pad // tm,),
                in_specs=[
                    pl.BlockSpec((tm, Din), lambda i: (i, 0)),
                    pl.BlockSpec((Din, Dout), lambda i: (0, 0)),   # resident
                    pl.BlockSpec((1, Dout), lambda i: (0, 0)),     # resident
                ],
                out_specs=pl.BlockSpec((tm, Dout), lambda i: (i, 0)),
            ),
            compiler_params=pltpu.CompilerParams(
                dimension_semantics=("parallel",),
                vmem_limit_bytes=_VMEM_LIMIT_BYTES,
            ),
            cost_estimate=cost,
        )(x, w, b2)
    else:
        # Fallback: tiled K-reduction with an f32 VMEM accumulator.
        tn = _pick_tile(Dout, tn, 128)
        tk = _pick_tile(Din, tk, 128)
        cost = pl.CostEstimate(
            flops=2 * m_pad * Dout * Din,
            transcendentals=0,
            bytes_accessed=(x_itemsize * (m_pad * Din * (Dout // tn)
                                          + m_pad * Dout)
                            + w_itemsize * (Din * Dout * (m_pad // tm) + Dout)),
        )
        out = pl.pallas_call(
            _linear_tiled_kernel,
            out_shape=jax.ShapeDtypeStruct((m_pad, Dout), x.dtype),
            grid_spec=pltpu.PrefetchScalarGridSpec(
                num_scalar_prefetch=0,
                grid=(m_pad // tm, Dout // tn, Din // tk),   # K last (reduction)
                in_specs=[
                    pl.BlockSpec((tm, tk), lambda i, j, k: (i, k)),
                    pl.BlockSpec((tk, tn), lambda i, j, k: (k, j)),
                    pl.BlockSpec((1, tn), lambda i, j, k: (0, j)),
                ],
                out_specs=pl.BlockSpec((tm, tn), lambda i, j, k: (i, j)),
                scratch_shapes=[pltpu.VMEM((tm, tn), jnp.float32)],
            ),
            compiler_params=pltpu.CompilerParams(
                dimension_semantics=("parallel", "parallel", "arbitrary"),
                vmem_limit_bytes=_VMEM_LIMIT_BYTES,
            ),
            cost_estimate=cost,
        )(x, w, b2)

    if m_pad != N:
        out = out[:N]
    return out


# ---------------------------------------------------------------------------
# Flash-style scaled dot-product attention, fused (S, B, 3, NH, D) layout.
# Grid: (batch, head-block, q-tile, kv-tile); kv axis is the reduction.
# The softmax scale is already folded into the Q projection parameters.
# ---------------------------------------------------------------------------
def _flash_attn_kernel(q_ref, k_ref, v_ref, o_ref, m_ref, l_ref, acc_ref, *,
                       mxu_dtype):
    ki = pl.program_id(3)

    @pl.when(ki == 0)
    def _init():
        m_ref[...] = jnp.full_like(m_ref, -jnp.inf)
        l_ref[...] = jnp.zeros_like(l_ref)
        acc_ref[...] = jnp.zeros_like(acc_ref)

    compute_dtype = q_ref.dtype if mxu_dtype is None else mxu_dtype

    # Blocks arrive as (tq/tkv, 1, 1, hblk, D) from the fused (S, B, 3, NH, D)
    # layout.  Swap to head-major once (relayout cost is ~1/tq of the matmul).
    q = jnp.swapaxes(q_ref[:, 0, 0], 0, 1).astype(compute_dtype)  # (hblk, tq, D)
    k = jnp.swapaxes(k_ref[:, 0, 0], 0, 1).astype(compute_dtype)  # (hblk, tkv, D)
    v = jnp.swapaxes(v_ref[:, 0, 0], 0, 1)                        # (hblk, tkv, D)

    # QK^T: contract on D, batch over heads. f32 accumulation on the MXU.
    s = lax.dot_general(q, k,
                        dimension_numbers=(((2,), (2,)), ((0,), (0,))),
                        preferred_element_type=jnp.float32)       # (hblk,tq,tkv)

    m_prev = m_ref[...]                                           # (hblk, tq, 1)
    m_new = jnp.maximum(m_prev, jnp.max(s, axis=-1, keepdims=True))
    alpha = jnp.exp(m_prev - m_new)
    p = jnp.exp(s - m_new)                                        # unnormalized

    l_ref[...] = alpha * l_ref[...] + jnp.sum(p, axis=-1, keepdims=True)
    pv = lax.dot_general(p.astype(compute_dtype), v.astype(compute_dtype),
                         dimension_numbers=(((2,), (1,)), ((0,), (0,))),
                         preferred_element_type=jnp.float32)      # (hblk, tq, D)
    acc_ref[...] = alpha * acc_ref[...] + pv
    m_ref[...] = m_new

    @pl.when(ki == pl.num_programs(3) - 1)
    def _finalize():
        # One approx reciprocal per row (EUP), applied to the (hblk, tq, D)
        # accumulator instead of dividing the full probability matrix.
        inv_l = pl.reciprocal(l_ref[...], approx=True)
        o = acc_ref[...] * inv_l                                  # (hblk, tq, D)
        # Output is written directly in (S, B, NH, D); single transpose in the
        # epilogue (once per q tile), so no post-hoc XLA transpose is needed.
        o_ref[:, 0] = jnp.swapaxes(o, 0, 1).astype(o_ref.dtype)


def pallas_flash_attention_fused(qkv, *, tq=256, tkv=256, mxu_dtype=None):
    """qkv: (S, B, 3, NH, D) view of the QKV projection -> (S, B, NH, D).

    No mask, no dropout. tq/tkv can be raised (e.g. 512) on v5e/v6e's 128 MiB
    VMEM; 256 is a safe default that also fits v7x's 64 MiB.
    """
    S, B, three, NH, D = qkv.shape
    assert three == 3

    tq = _pick_tile(S, tq)
    tkv = _pick_tile(S, tkv)
    hblk = _pick_head_block(NH, D, B, S // tq)

    q_spec = pl.BlockSpec((tq, 1, 1, hblk, D), lambda b, h, i, j: (i, b, 0, h, 0))
    k_spec = pl.BlockSpec((tkv, 1, 1, hblk, D), lambda b, h, i, j: (j, b, 1, h, 0))
    v_spec = pl.BlockSpec((tkv, 1, 1, hblk, D), lambda b, h, i, j: (j, b, 2, h, 0))
    o_spec = pl.BlockSpec((tq, 1, hblk, D), lambda b, h, i, j: (i, b, h, 0))

    itemsize = jnp.dtype(qkv.dtype).itemsize
    n_q_tiles = S // tq
    cost = pl.CostEstimate(
        flops=4 * B * NH * S * S * D,
        transcendentals=B * NH * S * S,
        # Q read once, K/V re-streamed once per q tile, O written once.
        bytes_accessed=itemsize * B * NH * S * D * (2 + 2 * n_q_tiles),
    )

    return pl.pallas_call(
        partial(_flash_attn_kernel, mxu_dtype=mxu_dtype),
        out_shape=jax.ShapeDtypeStruct((S, B, NH, D), qkv.dtype),
        grid_spec=pltpu.PrefetchScalarGridSpec(
            num_scalar_prefetch=0,
            grid=(B, NH // hblk, S // tq, S // tkv),
            in_specs=[q_spec, k_spec, v_spec],
            out_specs=o_spec,
            scratch_shapes=[
                pltpu.VMEM((hblk, tq, 1), jnp.float32),   # running max
                pltpu.VMEM((hblk, tq, 1), jnp.float32),   # running sum
                pltpu.VMEM((hblk, tq, D), jnp.float32),   # output accumulator
            ],
        ),
        compiler_params=pltpu.CompilerParams(
            dimension_semantics=("parallel", "parallel", "parallel",
                                 "arbitrary"),
            vmem_limit_bytes=_VMEM_LIMIT_BYTES,
        ),
        cost_estimate=cost,
    )(qkv, qkv, qkv)


# ---------------------------------------------------------------------------
# Full forward (self-attention, sbhd, GQA groups == num_heads)
# ---------------------------------------------------------------------------
def multihead_attention_forward(x, params, num_heads, *, mxu_dtype=None):
    # x: (S, B, H)
    S, B, H = x.shape
    d = H // num_heads
    hidden_q = num_heads * d
    hidden_kv = num_heads * d  # num_gqa_groups == num_heads
    scale = 1.0 / math.sqrt(d)

    # Fold the 1/sqrt(D) softmax scale into the Q columns of the QKV
    # projection (done here once per call; in a real model fold at load time).
    wdt = params["w_qkv"].dtype
    col_scale = jnp.concatenate([
        jnp.full((hidden_q,), scale, dtype=wdt),
        jnp.ones((2 * hidden_kv,), dtype=wdt),
    ])
    w_qkv = params["w_qkv"] * col_scale[None, :]
    b_qkv = params["b_qkv"] * col_scale

    x2 = x.reshape(S * B, H)

    # Fused QKV projection (weight-resident Pallas matmul) -> (S*B, 3H).
    qkv = pallas_linear(x2, w_qkv, b_qkv)

    # Free view as (S, B, 3, NH, D): the attention BlockSpecs pick q/k/v out
    # of dim 2, so no XLA transposes or slices touch HBM.
    qkv5 = qkv.reshape(S, B, 3, num_heads, d)
    # GQA repeat is the identity here (g = num_heads // num_gqa_groups = 1).

    # TODO(synk): attention dropout (training mode) not implemented; eval-mode
    # semantics (dropout_p = 0) are reproduced here.
    o = pallas_flash_attention_fused(qkv5, mxu_dtype=mxu_dtype)   # (S,B,NH,D)

    # (S, B, NH, D) -> (S*B, H) is a free reshape (contiguous).
    o2 = o.reshape(S * B, H)

    # Output projection (weight-resident Pallas matmul).
    out = pallas_linear(o2, params["w_proj"], params["b_proj"])   # (S*B, H)
    return out.reshape(S, B, H)


# ---------------------------------------------------------------------------
# Pure-JAX reference (for correctness check)
# ---------------------------------------------------------------------------
def reference_forward(x, params, num_heads):
    S, B, H = x.shape
    d = H // num_heads
    x2 = x.reshape(S * B, H)
    qkv = x2 @ params["w_qkv"] + params["b_qkv"]
    q, k, v = jnp.split(qkv, [H, 2 * H], axis=-1)

    def to_bhsd(t):
        return t.reshape(S, B, num_heads, d).transpose(1, 2, 0, 3)

    qh, kh, vh = to_bhsd(q), to_bhsd(k), to_bhsd(v)
    s = jnp.einsum("bhqd,bhkd->bhqk", qh, kh) / math.sqrt(d)
    p = jax.nn.softmax(s, axis=-1)
    o = jnp.einsum("bhqk,bhkd->bhqd", p, vh)
    o = o.transpose(2, 0, 1, 3).reshape(S * B, H)
    out = o @ params["w_proj"] + params["b_proj"]
    return out.reshape(S, B, H)


if __name__ == "__main__":
    # Small config: hidden=32, heads=4 (head_dim=8), seq=8, batch=2.
    hidden_size = 32
    num_heads = 4
    seq_len = 8
    batch = 2
    hidden_kv = hidden_size  # num_gqa_groups == num_heads

    key = jax.random.PRNGKey(0)
    k_x, k_wqkv, k_bqkv, k_wp, k_bp = jax.random.split(key, 5)

    # Deterministic synthetic parameters. Stored as (Din, Dout) so the kernel
    # computes x @ W + b (equivalent to PyTorch's F.linear(x, W.T) convention).
    params = {
        "w_qkv": jax.random.normal(
            k_wqkv, (hidden_size, hidden_size + 2 * hidden_kv), jnp.float32) * 0.05,
        "b_qkv": jax.random.normal(
            k_bqkv, (hidden_size + 2 * hidden_kv,), jnp.float32) * 0.05,
        "w_proj": jax.random.normal(
            k_wp, (hidden_size, hidden_size), jnp.float32) * 0.05,
        "b_proj": jax.random.normal(
            k_bp, (hidden_size,), jnp.float32) * 0.05,
    }

    # layout: x is (S, B, H) -- qkv_format='sbhd'
    x = jax.random.normal(k_x, (seq_len, batch, hidden_size), jnp.float32)

    out = multihead_attention_forward(x, params, num_heads)
    out = jax.block_until_ready(out)

    ref = reference_forward(x, params, num_heads)
    assert out.shape == (seq_len, batch, hidden_size)
    # approx reciprocal in the softmax epilogue slightly loosens tolerance
    assert jnp.allclose(out, ref, atol=2e-3, rtol=2e-3), (
        "mismatch vs reference, max abs diff = "
        f"{float(jnp.max(jnp.abs(out - ref)))}")

    # bf16 smoke test: exercises the bf16-MXU path (loose tolerance vs f32 ref).
    params_bf16 = {k: v.astype(jnp.bfloat16) for k, v in params.items()}
    x_bf16 = x.astype(jnp.bfloat16)
    out_bf16 = multihead_attention_forward(x_bf16, params_bf16, num_heads)
    out_bf16 = jax.block_until_ready(out_bf16)
    assert out_bf16.shape == (seq_len, batch, hidden_size)
    assert jnp.allclose(out_bf16.astype(jnp.float32), ref, atol=1e-1, rtol=1e-1)

    print("KERNEL_OK")
</pallas_src>

<mosaic_0001>
module attributes {stable_mosaic.version = 11 : i64} {
  func.func @_linear_resident_kernel(%arg0: i32, %arg1: memref<16x32xf32, #tpu.memory_space<vmem>>, %arg2: memref<32x96xf32, #tpu.memory_space<vmem>>, %arg3: memref<1x96xf32, #tpu.memory_space<vmem>>, %arg4: memref<16x96xf32, #tpu.memory_space<vmem>>) attributes {dimension_semantics = [#tpu.dimension_semantics<parallel>], iteration_bounds = array<i64: 1>, scalar_prefetch = 0 : i64, scratch_operands = 0 : i64, tpu.core_type = #tpu.core_type<tc>, window_params = [{transform_indices = @transform_0, window_bounds = array<i64: 16, 32>}, {pipeline_mode = #tpu.pipeline_mode<synchronous>, transform_indices = @transform_1, window_bounds = array<i64: 32, 96>}, {pipeline_mode = #tpu.pipeline_mode<synchronous>, transform_indices = @transform_2, window_bounds = array<i64: 1, 96>}, {transform_indices = @transform_3, window_bounds = array<i64: 16, 96>}]} {
    %c0 = arith.constant 0 : index
    %c0_0 = arith.constant 0 : index
    %0 = vector.load %arg1[%c0, %c0_0] : memref<16x32xf32, #tpu.memory_space<vmem>>, vector<16x32xf32>
    %c0_1 = arith.constant 0 : index
    %c0_2 = arith.constant 0 : index
    %1 = vector.load %arg2[%c0_1, %c0_2] : memref<32x96xf32, #tpu.memory_space<vmem>>, vector<32x96xf32>
    %cst = arith.constant dense<0.000000e+00> : vector<16x96xf32>
    %2 = tpu.matmul %0, %1, %cst {dimension_numbers = #tpu.dot_dimension_numbers<[1], [0], [0], [1], [0, 0, 1, 1], [], []>} : vector<16x32xf32>, vector<32x96xf32>, vector<16x96xf32> -> vector<16x96xf32>
    %c0_3 = arith.constant 0 : index
    %c0_4 = arith.constant 0 : index
    %3 = vector.load %arg3[%c0_3, %c0_4] : memref<1x96xf32, #tpu.memory_space<vmem>>, vector<1x96xf32>
    %4 = vector.broadcast %3 : vector<1x96xf32> to vector<16x96xf32>
    %5 = arith.addf %2, %4 : vector<16x96xf32>
    %c0_5 = arith.constant 0 : index
    %c0_6 = arith.constant 0 : index
    %6 = vector.load %arg4[%c0_5, %c0_6] : memref<16x96xf32, #tpu.memory_space<vmem>>, vector<16x96xf32>
    tpu.vector_store %arg4[%c0_5, %c0_6], %5 {strides = array<i32>} : memref<16x96xf32, #tpu.memory_space<vmem>>, vector<16x96xf32>,
    return
  }
  func.func @transform_0(%arg0: i32) -> (i32, i32) {
    %c0_i32 = arith.constant 0 : i32
    %c0_i32_0 = arith.constant 0 : i32
    return %arg0, %c0_i32 : i32, i32
  }
  func.func @transform_1(%arg0: i32) -> (i32, i32) {
    %c0_i32 = arith.constant 0 : i32
    %c0_i32_0 = arith.constant 0 : i32
    %c0_i32_1 = arith.constant 0 : i32
    return %c0_i32, %c0_i32_0 : i32, i32
  }
  func.func @transform_2(%arg0: i32) -> (i32, i32) {
    %c0_i32 = arith.constant 0 : i32
    %c0_i32_0 = arith.constant 0 : i32
    %c0_i32_1 = arith.constant 0 : i32
    return %c0_i32, %c0_i32_0 : i32, i32
  }
  func.func @transform_3(%arg0: i32) -> (i32, i32) {
    %c0_i32 = arith.constant 0 : i32
    %c0_i32_0 = arith.constant 0 : i32
    return %arg0, %c0_i32 : i32, i32
  }
}

</mosaic_0001>

<bundles_post_ra>
// kernel: tpu_custom_call.1
= control target key start
LH: loop header
LB: loop body
LE: loop exit
PB: predicated region body
PF: predicated region fallthrough
CT: control target
= control target key end

     0   :  { %8 = vsyncpa [#allocation3], 0  ;;  %s246_s0 = inlined_call_operand.hbm [shape: f32[16,32], index: 0, kind: input, shape index: {}]   ;;  %s247_s1 = inlined_call_operand.hbm [shape: f32[32,96], index: 1, kind: input, shape index: {}]   ;;  %s248_s2 = inlined_call_operand.vmem [shape: f32[1,96], index: 2, kind: input, shape index: {}]   ;;  %s249_s3 = inlined_call_operand.hbm [shape: f32[16,96], index: 3, kind: output, shape index: {}]  }
   0x1   :  { %9 = vsyncpa [#allocation6], 0 }
   0x2   :  { %10 = vsyncpa [#allocation4], 0  ;;  %s15_s14 = sshll.u32 %s246_s0, 4  ;;  %s200_s15 = smov [#allocation2]   ;;  %s16_s14 = int_to_ptr.hbm [resolvable:$true] %s15_s14 }
   0x3   :  { %s17_s16 = sshll.u32 %s200_s15, 4  ;;  %s28_s19 = sshll.u32 %s247_s1, 4  ;;  %s18_s16 = int_to_ptr.vmem [resolvable:$true] %s17_s16  ;;  %s29_s19 = int_to_ptr.hbm [resolvable:$true] %s28_s19 }
   0x4   :  { %s201_s20 = smov 128   ;;  %s202_s21 = smov 8  }
   0x5   :  { %23 = dma.hbm_to_vmem [thread:$0]  %s16_s14, 256, %s18_s16, [#allocation3], %s201_s20, %s201_s20, %s202_s21  }
   0x6   :  { %s203_s22 = smov [#allocation5]  }
   0x7   :  { %s30_s23 = sshll.u32 %s203_s22, 4  ;;  %s31_s23 = int_to_ptr.vmem [resolvable:$true] %s30_s23 }
   0x8   :  { %36 = dma.hbm_to_vmem [thread:$0]  %s29_s19, 512, %s31_s23, [#allocation6], %s201_s20, %s201_s20, %s202_s21  }
   0x9   :  { %194 = dma.done.wait [#allocation3], 256  }
   0xa   :  { %195 = vsyncadd [#allocation3], 4294967040 }
   0xb   :  { %196 = dma.done.wait [#allocation6], 512  }
   0xc   :  { %197 = vsyncadd [#allocation6], 4294966784  ;;  %v52_v0 = vld [vmem:[#allocation5 + $0x18] sm:$0xff]  ;;  %v51_v1 = vld [vmem:[#allocation5 + $0x10] sm:$0xff]  ;;  %vm57_vm0 = vcmask 261120   ;;  %s204_s24 = smov [#allocation7]  }
   0xd   :  { %76 = vmatpush.msra.mxu0 %v52_v0  ;;  %112 = vmatpush.msra.mxu1 %v52_v0  ;;  %v50_v2 = vld [vmem:[#allocation5 + $0x8] sm:$0xff]  ;;  %v49_v3 = vld [vmem:[#allocation5] sm:$0xff]  ;;  %v47_v4 = vld [vmem:[#allocation2] sm:$0xff]  ;;  %s94_s25 = sshll.u32 %s204_s24, 4  ;;  %s96_s28 = sshll.u32 %s249_s3, 4  ;;  %vm87_vm1 = vcmask 785408   ;;  %s95_s25 = int_to_ptr.vmem [resolvable:$true] %s94_s25  ;;  %s97_s28 = int_to_ptr.hbm [resolvable:$true] %s96_s28 }
   0xe   :  { %v48_v5 = vld [vmem:[#allocation2 + $0x8] sm:$0xff]  ;;  %v121_v6 = vld [vmem:[%s248_s2] ss:$0 sm:$0xff] }
   0xf   :  { %77 = vmatpush.msra.mxu0 %v51_v1  ;;  %113 = vmatpush.msra.mxu1 %v51_v1 }
  0x11   :  { %78 = vmatpush.msra.mxu0 %v50_v2  ;;  %114 = vmatpush.msra.mxu1 %v50_v2 }
  0x13   :  { %79 = vmatpush.msra.mxu0 %v49_v3  ;;  %115 = vmatpush.msra.mxu1 %v49_v3 }
  0x14   :  { %110 = vmatmul.msk.f32.vlgmr.msra.gmra.mxu0 %vm57_vm0, %v47_v4  ;;  %111 = vmatmul.msk.f32.vlgmr.msra.gmra.mxu1 %vm57_vm0, %v48_v5 }
  0x91   :  { %v81_v7 = vpop.f32.mrf.mxu0  ;;  %v84_v8 = vpop.f32.mrf.mxu1 }
  0x92   :  { %v82_v9 = vadd.f32 %v121_v6, %v81_v7  ;;  %v85_v10 = vadd.f32 %v121_v6, %v84_v8 }
  0x94   :  { %88 = vst.msk [vmem:[#allocation7] sm:$0xff] %vm87_vm1, %v82_v9 }
  0x95   :  { %89 = vst.msk [vmem:[#allocation7 + $0x8] sm:$0xff] %vm87_vm1, %v85_v10 }
  0x96   :  { %102 = dma.vmem_to_hbm [thread:$0]  %s95_s25, 256, %s97_s28, [#allocation4], %s201_s20, %s201_s20, %s202_s21  }
  0x97   :  { %198 = dma.done.wait [#allocation4], 256  }
  0x98   :  { %199 = vsyncadd [#allocation4], 4294967040 }
  0x99   :  { %107 = vsyncpa [#allocation3], 1 }
  0x9a   :  { %108 = vsyncpa [#allocation6], 1 }
  0x9b   :  { %109 = vsyncpa [#allocation4], 1 }

</bundles_post_ra>
